<compile_context>
chip_gen: v7x
topology: tpu7x:2x2x1
jax: 0.10.0
libtpu: 0.0.40
codegen_flags: <defaults>
</compile_context>

<pallas_src>
import jax
import jax.numpy as jnp
from jax.experimental import pallas as pl
from jax.experimental.pallas import tpu as pltpu


# ---------------------------------------------------------------------------
# pixel-tile selection
# ---------------------------------------------------------------------------
_STREAM_BUDGET = 20 << 20      # double-buffered streamed bytes per stage
_DESIRED_TP = 4096             # >=512 lanes already reaches ~85% of HBM roofline


def _choose_tp(p_img, bytes_per_px):
    """Largest 128-aligned divisor of the per-image pixel count H*W that fits
    the double-buffered VMEM stream budget (capped at _DESIRED_TP).  Divisor
    tiles => balanced grid, no padded pixel columns, no trailing slice.
    Falls back to the full pixel axis (always a legal block shape)."""
    cands = [d for d in range(128, p_img + 1, 128) if p_img % d == 0]
    if not cands:
        return p_img
    fits = [d for d in cands if 2 * d * bytes_per_px <= _STREAM_BUDGET]
    pool = fits if fits else [min(cands)]
    under = [d for d in pool if d <= _DESIRED_TP]
    return max(under) if under else min(pool)


def _vmem_limit(stream_bytes_per_step, resident_bytes):
    est = 2 * stream_bytes_per_step + resident_bytes       # double-buffered
    return int(min(48 << 20, max(32 << 20, 2 * est)))      # 48 MiB cap: v7x-safe


# ---------------------------------------------------------------------------
# Pallas kernels
# ---------------------------------------------------------------------------
def _bn_relu_conv_kernel(x_ref, s_ref, b_ref, w_ref, o_ref):
    # one (Cin, tp) pixel tile of one image:  out = W @ relu(x*scale + shift)
    x = x_ref[...].astype(jnp.float32)                   # bf16 stream -> f32 VPU
    h = jnp.maximum(x * s_ref[...] + b_ref[...], 0.0)    # eval-BN + ReLU (f32)
    o_ref[...] = jnp.dot(w_ref[...], h.astype(w_ref.dtype),
                         preferred_element_type=jnp.float32).astype(o_ref.dtype)


def _fuse_kernel(bt_ref, s0_ref, b0_ref, w0_ref,
                 lvl_ref, u_ref, s1_ref, b1_ref, w1_ref, o_ref):
    # spp_fuse with the channel concat AND the bilinear upsample fused in:
    #   o  = W0 @ relu(bt * s0 + b0)               (full-res bottleneck level)
    #   o += W1 @ relu((lvl_bd @ U) * s1 + b1)     (all pooled levels at once)
    # Accumulation goes straight into the output VMEM block (no live f32
    # accumulator, no zero-init pass).
    h0 = jnp.maximum(bt_ref[...].astype(jnp.float32) * s0_ref[...] + b0_ref[...],
                     0.0)
    o_ref[...] = jnp.dot(w0_ref[...], h0.astype(w0_ref.dtype),
                         preferred_element_type=jnp.float32).astype(o_ref.dtype)
    up = jnp.dot(lvl_ref[...], u_ref[...],               # in-kernel bilinear
                 preferred_element_type=jnp.float32)      # upsample of all levels
    h1 = jnp.maximum(up * s1_ref[...] + b1_ref[...], 0.0)
    o_ref[...] += jnp.dot(w1_ref[...], h1.astype(w1_ref.dtype),
                          preferred_element_type=jnp.float32).astype(o_ref.dtype)


# ---------------------------------------------------------------------------
# Pallas wrappers
# ---------------------------------------------------------------------------
def _bn_relu_conv_pallas(x, scale, shift, w, out_dtype):
    """x: (N, Cin, P); returns (N, Cout, P) = W @ relu(x*scale+shift) per pixel."""
    N, Cin, P = map(int, x.shape)
    Cout = int(w.shape[0])
    bpx = Cin * x.dtype.itemsize + Cout * jnp.dtype(out_dtype).itemsize
    tp = _choose_tp(P, bpx)
    resident = int(w.size) * w.dtype.itemsize + 2 * Cin * 4
    return pl.pallas_call(
        _bn_relu_conv_kernel,
        out_shape=jax.ShapeDtypeStruct((N, Cout, P), out_dtype),
        grid=(P // tp, N),
        in_specs=[
            pl.BlockSpec((None, Cin, tp), lambda hb, n: (n, 0, hb)),
            pl.BlockSpec((Cin, 1), lambda hb, n: (0, 0)),
            pl.BlockSpec((Cin, 1), lambda hb, n: (0, 0)),
            pl.BlockSpec((Cout, Cin), lambda hb, n: (0, 0)),
        ],
        out_specs=pl.BlockSpec((None, Cout, tp), lambda hb, n: (n, 0, hb)),
        compiler_params=pltpu.CompilerParams(
            dimension_semantics=("parallel", "parallel"),
            vmem_limit_bytes=_vmem_limit(tp * bpx, resident)),
        cost_estimate=pl.CostEstimate(
            flops=int(2 * N * P * Cout * Cin), transcendentals=0,
            bytes_accessed=int(N * P * bpx + resident)),
    )(x, scale, shift, w)


def _fuse_pallas(bt, s0, b0, w0, lvl_bd, u_cat, s1, b1, w1):
    """spp_fuse: channel concat + bilinear upsample + BN/ReLU + 1x1 conv fused
    into one pallas_call.  Returns (N, Cout, P) f32."""
    N, C0, P = map(int, bt.shape)
    Call, Gall = int(lvl_bd.shape[1]), int(lvl_bd.shape[2])
    Cout = int(w0.shape[0])
    bpx = C0 * bt.dtype.itemsize + Gall * u_cat.dtype.itemsize + Cout * 4
    tp = _choose_tp(P, bpx)
    resident = ((int(w0.size) + int(w1.size)) * w0.dtype.itemsize
                + (C0 + Call) * 8
                + N * Call * Gall * lvl_bd.dtype.itemsize)
    return pl.pallas_call(
        _fuse_kernel,
        out_shape=jax.ShapeDtypeStruct((N, Cout, P), jnp.float32),
        # n is the fastest grid axis: the U tile's block index is constant
        # across n, so its DMA is skipped on consecutive revisits.
        grid=(P // tp, N),
        in_specs=[
            pl.BlockSpec((None, C0, tp), lambda hb, n: (n, 0, hb)),     # bt tile
            pl.BlockSpec((C0, 1), lambda hb, n: (0, 0)),                # scale[:C0]
            pl.BlockSpec((C0, 1), lambda hb, n: (0, 0)),                # shift[:C0]
            pl.BlockSpec((Cout, C0), lambda hb, n: (0, 0)),             # W[:, :C0]
            pl.BlockSpec((None, Call, Gall), lambda hb, n: (n, 0, 0)),  # pooled lvls
            pl.BlockSpec((Gall, tp), lambda hb, n: (0, hb)),            # interp U
            pl.BlockSpec((Call, 1), lambda hb, n: (0, 0)),              # scale[C0:]
            pl.BlockSpec((Call, 1), lambda hb, n: (0, 0)),              # shift[C0:]
            pl.BlockSpec((Cout, Call), lambda hb, n: (0, 0)),           # W[:, C0:]
        ],
        out_specs=pl.BlockSpec((None, Cout, tp), lambda hb, n: (n, 0, hb)),
        compiler_params=pltpu.CompilerParams(
            dimension_semantics=("parallel", "parallel"),
            vmem_limit_bytes=_vmem_limit(tp * bpx, resident)),
        cost_estimate=pl.CostEstimate(
            flops=int(2 * N * P * (Cout * (C0 + Call) + Call * Gall)),
            transcendentals=0,
            bytes_accessed=int(N * P * bpx + resident)),
    )(bt, s0, b0, w0, lvl_bd, u_cat, s1, b1, w1)


# ---------------------------------------------------------------------------
# pure-JAX pieces (tiny grids) and the reference conv
# ---------------------------------------------------------------------------
def _bn_relu_conv_ref(x, scale, shift, w, out_dtype):
    """Pure-JAX reference for the Pallas 1x1-conv kernel (same dtype contract)."""
    h = jnp.maximum(x.astype(jnp.float32) * scale[None] + shift[None], 0.0)
    y = jnp.einsum('oc,ncp->nop', w, h.astype(w.dtype),
                   preferred_element_type=jnp.float32)
    return y.astype(out_dtype)


def _bn_relu_conv_small(x_ncg, scale, shift, w):
    """Sub-tile pooled pyramid levels (a handful of pixels): plain JAX."""
    h = jnp.maximum(x_ncg * scale[None] + shift[None], 0.0)
    return jnp.einsum('oc,ncg->nog', w, h.astype(w.dtype),
                      preferred_element_type=jnp.float32)


def _adaptive_avg_pool2d(x, out_hw):
    """torch.nn.functional.adaptive_avg_pool2d semantics, NCHW, f32 output."""
    _, _, H, W = x.shape
    OH, OW = out_hw
    x = x.astype(jnp.float32)
    rows = []
    for i in range(OH):
        h0, h1 = (i * H) // OH, -(-((i + 1) * H) // OH)
        cols = []
        for j in range(OW):
            w0, w1 = (j * W) // OW, -(-((j + 1) * W) // OW)
            cols.append(jnp.mean(x[:, :, h0:h1, w0:w1], axis=(2, 3)))
        rows.append(jnp.stack(cols, axis=-1))
    return jnp.stack(rows, axis=-2)            # (N, C, OH, OW)


def _interp_matrix(out_size, in_size):
    """Bilinear 1-D interp matrix, align_corners=False (PyTorch default)."""
    i = jnp.arange(out_size, dtype=jnp.float32)
    scale = in_size / out_size
    src = jnp.maximum((i + 0.5) * scale - 0.5, 0.0)
    i0 = jnp.clip(jnp.floor(src).astype(jnp.int32), 0, in_size - 1)
    i1 = jnp.minimum(i0 + 1, in_size - 1)
    lam = src - i0.astype(jnp.float32)
    rows = jnp.arange(out_size)
    m = jnp.zeros((out_size, in_size), jnp.float32)
    m = m.at[rows, i0].add(1.0 - lam)
    m = m.at[rows, i1].add(lam)
    return m


def _bilinear_matrix(in_hw, out_hw):
    """Stacked separable bilinear-upsample matrix U: up[c, p] = lvl[c, :] @ U[:, p]."""
    gh, gw = in_hw
    H, W = out_hw
    rh = _interp_matrix(H, gh)                 # (H, gh)
    rw = _interp_matrix(W, gw)                 # (W, gw)
    u = jnp.einsum('hi,wj->ijhw', rh, rw)      # U[(gi,gj),(h,w)] = rh[h,gi]*rw[w,gj]
    return u.reshape(gh * gw, H * W)


# ---------------------------------------------------------------------------
# parameter construction (deterministic synthetic; eval-mode BN folded)
# ---------------------------------------------------------------------------
def make_bnreluconv_params(key, cin, cout, eps=1e-5):
    k1, k2, k3, k4, k5 = jax.random.split(key, 5)
    gamma = jax.random.uniform(k1, (cin,), jnp.float32, 0.5, 1.5)
    beta = 0.1 * jax.random.normal(k2, (cin,), jnp.float32)
    rmean = 0.1 * jax.random.normal(k3, (cin,), jnp.float32)
    rvar = jax.random.uniform(k4, (cin,), jnp.float32, 0.5, 1.5)
    scale = gamma / jnp.sqrt(rvar + eps)
    shift = beta - rmean * scale
    # Conv2d(cin, cout, k=1, bias=False) weight (cout, cin, 1, 1) -> (cout, cin)
    w = 0.1 * jax.random.normal(k5, (cout, cin), jnp.float32)
    return {"scale": scale.reshape(cin, 1), "shift": shift.reshape(cin, 1), "w": w}


def make_spp_params(key, num_maps_in, num_levels, bt_size, level_size, out_size):
    keys = jax.random.split(key, num_levels + 2)
    params = [make_bnreluconv_params(keys[0], num_maps_in, bt_size)]
    final_size = bt_size
    for i in range(num_levels):
        final_size += level_size
        params.append(make_bnreluconv_params(keys[i + 1], bt_size, level_size))
    params.append(make_bnreluconv_params(keys[-1], final_size, out_size))
    return params


# ---------------------------------------------------------------------------
# SpatialPyramidPooling forward (eval mode, drop_rate = 0)
# ---------------------------------------------------------------------------
# TODO(synk): training-mode BatchNorm statistics, gradient checkpointing and
# dropout (drop_rate > 0) are not reproduced; this is the eval forward pass.
def spatial_pyramid_pooling(x_nchw, params, grids, square_grid=False,
                            use_pallas=True, mm_dtype=jnp.bfloat16):
    N, Cin, H, W = x_nchw.shape
    ar = W / H
    P = H * W
    conv1x1 = _bn_relu_conv_pallas if use_pallas else _bn_relu_conv_ref

    # single layout change on entry: NCHW -> (N, C, P); stream x in bf16
    x = x_nchw.reshape(N, Cin, P).astype(mm_dtype)

    # spp_bn (full resolution).  bt goes to HBM in bf16: it is re-read twice
    # (adaptive pooling + fuse level 0), so halving its bytes matters.
    p0 = params[0]
    bt = conv1x1(x, p0["scale"], p0["shift"], p0["w"].astype(mm_dtype), mm_dtype)
    C0 = int(bt.shape[1])
    bt_nchw = bt.reshape(N, C0, H, W)

    # pyramid levels: adaptive avg pool + tiny 1x1 conv (plain JAX: pooled maps
    # are at most N*6*6 pixels, far below one (8,128) tile).
    num = len(params) - 1
    lvls, u_mats = [], []
    for i in range(1, num):
        g = grids[i - 1]
        gh, gw = (g, g) if square_grid else (g, max(1, round(ar * g)))
        pooled = _adaptive_avg_pool2d(bt_nchw, (gh, gw))
        prm = params[i]
        lvl = _bn_relu_conv_small(pooled.reshape(N, C0, gh * gw),
                                  prm["scale"], prm["shift"],
                                  prm["w"].astype(mm_dtype))   # (N, Cl, gh*gw) f32
        lvls.append(lvl.astype(mm_dtype))
        u_mats.append(_bilinear_matrix((gh, gw), (H, W)).astype(mm_dtype))

    # spp_fuse parameters, split into the full-res (bt) slice and the rest
    fuse = params[-1]
    s_all, b_all = fuse["scale"], fuse["shift"]
    w_all = fuse["w"].astype(mm_dtype)

    if not lvls:                                 # degenerate num_levels == 0
        out = conv1x1(bt, s_all, b_all, w_all, jnp.float32)
        return out.reshape(N, -1, H, W)

    s0f, b0f, w0f = s_all[:C0], b_all[:C0], w_all[:, :C0]
    s1f, b1f, w1f = s_all[C0:], b_all[C0:], w_all[:, C0:]

    if use_pallas:
        # Block-diagonal stack of the tiny level outputs (VMEM-resident) and a
        # stacked bilinear-interp matrix streamed per pixel tile: the fuse
        # kernel reconstructs every upsampled level in-kernel, so the
        # full-resolution levels never hit HBM.
        c_all = sum(int(lv.shape[1]) for lv in lvls)
        g_all = sum(int(lv.shape[2]) for lv in lvls)
        lvl_bd = jnp.zeros((N, c_all, g_all), mm_dtype)
        co = go = 0
        for lv in lvls:
            lvl_bd = lvl_bd.at[:, co:co + lv.shape[1], go:go + lv.shape[2]].set(lv)
            co += int(lv.shape[1])
            go += int(lv.shape[2])
        u_cat = jnp.concatenate(u_mats, axis=0)                   # (g_all, P)
        out = _fuse_pallas(bt, s0f, b0f, w0f, lvl_bd, u_cat, s1f, b1f, w1f)
    else:
        # reference path mirrors the original module: materialize the
        # bilinear-upsampled levels, concat channels, BN/ReLU, 1x1 conv.
        ups = [jnp.einsum('ncg,gp->ncp', lv, u,
                          preferred_element_type=jnp.float32)
               for lv, u in zip(lvls, u_mats)]
        xcat = jnp.concatenate([bt.astype(jnp.float32)] + ups, axis=1)
        h = jnp.maximum(xcat * s_all[None] + b_all[None], 0.0)
        out = jnp.einsum('oc,ncp->nop', w_all, h.astype(mm_dtype),
                         preferred_element_type=jnp.float32)

    # (N, Cout, P) -> NCHW is just a reshape (no transpose anywhere)
    return out.reshape(N, -1, H, W)


# ---------------------------------------------------------------------------
if __name__ == "__main__":
    key = jax.random.PRNGKey(0)
    kx, kp = jax.random.split(key)

    # small shapes consistent with the module (NCHW input)
    N, Cin, H, W = 2, 4, 16, 16
    num_levels = 3
    bt_size, level_size, out_size = 32, 16, 32
    grids = [6, 3, 2, 1]

    x = jax.random.normal(kx, (N, Cin, H, W), jnp.float32)
    params = make_spp_params(kp, Cin, num_levels, bt_size, level_size, out_size)

    fwd = jax.jit(lambda xx: spatial_pyramid_pooling(xx, params, grids,
                                                     use_pallas=True))
    out = jax.block_until_ready(fwd(x))
    assert out.shape == (N, out_size, H, W), out.shape

    # cross-check the Pallas hot path (incl. fused concat + in-kernel bilinear
    # upsample) against a pure-JAX reference that mirrors the original module
    # structure with the same bf16-operand / f32-accumulate precision contract.
    ref = jax.block_until_ready(
        spatial_pyramid_pooling(x, params, grids, use_pallas=False))
    max_err = float(jnp.max(jnp.abs(out - ref)))
    assert jnp.allclose(out, ref, atol=2e-3, rtol=2e-3), max_err

    print("KERNEL_OK")
</pallas_src>

<mosaic_0001>
module attributes {stable_mosaic.version = 11 : i64} {
  func.func private @main(%arg0: i32) attributes {dimension_semantics = [#tpu.dimension_semantics<core_parallel>], iteration_bounds = array<i64: 2>, tpu.core_type = #tpu.core_type<sc_scalar_subcore>, window_params = []} {
    return
  }
}

module attributes {stable_mosaic.version = 11 : i64} {
  func.func private @main(%arg0: i32) attributes {dimension_semantics = [#tpu.dimension_semantics<core_parallel>], iteration_bounds = array<i64: 2>, tpu.core_type = #tpu.core_type<sc_scalar_subcore>, window_params = []} {
    return
  }
}

module attributes {stable_mosaic.version = 11 : i64} {
  func.func @_bn_relu_conv_kernel(%arg0: i32, %arg1: i32, %arg2: memref<1x4x256xbf16, #tpu.memory_space<vmem>>, %arg3: memref<4x1xf32, #tpu.memory_space<vmem>>, %arg4: memref<4x1xf32, #tpu.memory_space<vmem>>, %arg5: memref<32x4xbf16, #tpu.memory_space<vmem>>, %arg6: memref<1x32x256xbf16, #tpu.memory_space<vmem>>) attributes {dimension_semantics = [#tpu.dimension_semantics<parallel>, #tpu.dimension_semantics<parallel>], iteration_bounds = array<i64: 1, 2>, scalar_prefetch = 0 : i64, scratch_operands = 0 : i64, tpu.core_type = #tpu.core_type<tc>, window_params = [{transform_indices = @transform_0, window_bounds = array<i64: 1, 4, 256>}, {pipeline_mode = #tpu.pipeline_mode<synchronous>, transform_indices = @transform_1, window_bounds = array<i64: 4, 1>}, {pipeline_mode = #tpu.pipeline_mode<synchronous>, transform_indices = @transform_2, window_bounds = array<i64: 4, 1>}, {pipeline_mode = #tpu.pipeline_mode<synchronous>, transform_indices = @transform_3, window_bounds = array<i64: 32, 4>}, {transform_indices = @transform_4, window_bounds = array<i64: 1, 32, 256>}]} {
    %c0 = arith.constant 0 : index
    %c0_0 = arith.constant 0 : index
    %c0_1 = arith.constant 0 : index
    %0 = vector.load %arg2[%c0, %c0_0, %c0_1] : memref<1x4x256xbf16, #tpu.memory_space<vmem>>, vector<1x4x256xbf16>
    %1 = vector.shape_cast %0 : vector<1x4x256xbf16> to vector<4x256xbf16>
    %2 = arith.extf %1 : vector<4x256xbf16> to vector<4x256xf32>
    %c0_2 = arith.constant 0 : index
    %c0_3 = arith.constant 0 : index
    %3 = vector.load %arg3[%c0_2, %c0_3] : memref<4x1xf32, #tpu.memory_space<vmem>>, vector<4x1xf32>
    %4 = vector.broadcast %3 : vector<4x1xf32> to vector<4x256xf32>
    %5 = arith.mulf %2, %4 : vector<4x256xf32>
    %c0_4 = arith.constant 0 : index
    %c0_5 = arith.constant 0 : index
    %6 = vector.load %arg4[%c0_4, %c0_5] : memref<4x1xf32, #tpu.memory_space<vmem>>, vector<4x1xf32>
    %7 = vector.broadcast %6 : vector<4x1xf32> to vector<4x256xf32>
    %8 = arith.addf %5, %7 : vector<4x256xf32>
    %cst = arith.constant 0.000000e+00 : f32
    %9 = vector.broadcast %cst : f32 to vector<4x256xf32>
    %10 = arith.maximumf %8, %9 : vector<4x256xf32>
    %c0_6 = arith.constant 0 : index
    %c0_7 = arith.constant 0 : index
    %11 = vector.load %arg5[%c0_6, %c0_7] : memref<32x4xbf16, #tpu.memory_space<vmem>>, vector<32x4xbf16>
    %12 = arith.truncf %10 : vector<4x256xf32> to vector<4x256xbf16>
    %cst_8 = arith.constant dense<0.000000e+00> : vector<32x256xf32>
    %13 = tpu.matmul %11, %12, %cst_8 {dimension_numbers = #tpu.dot_dimension_numbers<[1], [0], [0], [1], [0, 0, 1, 1], [], []>} : vector<32x4xbf16>, vector<4x256xbf16>, vector<32x256xf32> -> vector<32x256xf32>
    %14 = arith.truncf %13 : vector<32x256xf32> to vector<32x256xbf16>
    %c0_9 = arith.constant 0 : index
    %c0_10 = arith.constant 0 : index
    %c0_11 = arith.constant 0 : index
    %15 = vector.load %arg6[%c0_9, %c0_10, %c0_11] : memref<1x32x256xbf16, #tpu.memory_space<vmem>>, vector<1x32x256xbf16>
    %16 = vector.shape_cast %15 : vector<1x32x256xbf16> to vector<32x256xbf16>
    %17 = vector.shape_cast %14 : vector<32x256xbf16> to vector<1x32x256xbf16>
    tpu.vector_store %arg6[%c0_9, %c0_10, %c0_11], %17 {strides = array<i32>} : memref<1x32x256xbf16, #tpu.memory_space<vmem>>, vector<1x32x256xbf16>,
    return
  }
  func.func @transform_0(%arg0: i32, %arg1: i32) -> (i32, i32, i32) {
    %c0_i32 = arith.constant 0 : i32
    %c0_i32_0 = arith.constant 0 : i32
    return %arg1, %c0_i32, %arg0 : i32, i32, i32
  }
  func.func @transform_1(%arg0: i32, %arg1: i32) -> (i32, i32) {
    %c0_i32 = arith.constant 0 : i32
    %c0_i32_0 = arith.constant 0 : i32
    %c0_i32_1 = arith.constant 0 : i32
    return %c0_i32, %c0_i32_0 : i32, i32
  }
  func.func @transform_2(%arg0: i32, %arg1: i32) -> (i32, i32) {
    %c0_i32 = arith.constant 0 : i32
    %c0_i32_0 = arith.constant 0 : i32
    %c0_i32_1 = arith.constant 0 : i32
    return %c0_i32, %c0_i32_0 : i32, i32
  }
  func.func @transform_3(%arg0: i32, %arg1: i32) -> (i32, i32) {
    %c0_i32 = arith.constant 0 : i32
    %c0_i32_0 = arith.constant 0 : i32
    %c0_i32_1 = arith.constant 0 : i32
    return %c0_i32, %c0_i32_0 : i32, i32
  }
  func.func @transform_4(%arg0: i32, %arg1: i32) -> (i32, i32, i32) {
    %c0_i32 = arith.constant 0 : i32
    %c0_i32_0 = arith.constant 0 : i32
    return %arg1, %c0_i32, %arg0 : i32, i32, i32
  }
}

module attributes {stable_mosaic.version = 11 : i64} {
  func.func @_fuse_kernel(%arg0: i32, %arg1: i32, %arg2: memref<1x32x256xbf16, #tpu.memory_space<vmem>>, %arg3: memref<32x1xf32, #tpu.memory_space<vmem>>, %arg4: memref<32x1xf32, #tpu.memory_space<vmem>>, %arg5: memref<32x32xbf16, #tpu.memory_space<vmem>>, %arg6: memref<1x48x49xbf16, #tpu.memory_space<vmem>>, %arg7: memref<49x256xbf16, #tpu.memory_space<vmem>>, %arg8: memref<48x1xf32, #tpu.memory_space<vmem>>, %arg9: memref<48x1xf32, #tpu.memory_space<vmem>>, %arg10: memref<32x48xbf16, #tpu.memory_space<vmem>>, %arg11: memref<1x32x256xf32, #tpu.memory_space<vmem>>) attributes {dimension_semantics = [#tpu.dimension_semantics<parallel>, #tpu.dimension_semantics<parallel>], iteration_bounds = array<i64: 1, 2>, scalar_prefetch = 0 : i64, scratch_operands = 0 : i64, tpu.core_type = #tpu.core_type<tc>, window_params = [{transform_indices = @transform_0, window_bounds = array<i64: 1, 32, 256>}, {pipeline_mode = #tpu.pipeline_mode<synchronous>, transform_indices = @transform_1, window_bounds = array<i64: 32, 1>}, {pipeline_mode = #tpu.pipeline_mode<synchronous>, transform_indices = @transform_2, window_bounds = array<i64: 32, 1>}, {pipeline_mode = #tpu.pipeline_mode<synchronous>, transform_indices = @transform_3, window_bounds = array<i64: 32, 32>}, {transform_indices = @transform_4, window_bounds = array<i64: 1, 48, 49>}, {transform_indices = @transform_5, window_bounds = array<i64: 49, 256>}, {pipeline_mode = #tpu.pipeline_mode<synchronous>, transform_indices = @transform_6, window_bounds = array<i64: 48, 1>}, {pipeline_mode = #tpu.pipeline_mode<synchronous>, transform_indices = @transform_7, window_bounds = array<i64: 48, 1>}, {pipeline_mode = #tpu.pipeline_mode<synchronous>, transform_indices = @transform_8, window_bounds = array<i64: 32, 48>}, {transform_indices = @transform_9, window_bounds = array<i64: 1, 32, 256>}]} {
    %c0 = arith.constant 0 : index
    %c0_0 = arith.constant 0 : index
    %c0_1 = arith.constant 0 : index
    %0 = vector.load %arg2[%c0, %c0_0, %c0_1] : memref<1x32x256xbf16, #tpu.memory_space<vmem>>, vector<1x32x256xbf16>
    %1 = vector.shape_cast %0 : vector<1x32x256xbf16> to vector<32x256xbf16>
    %2 = arith.extf %1 : vector<32x256xbf16> to vector<32x256xf32>
    %c0_2 = arith.constant 0 : index
    %c0_3 = arith.constant 0 : index
    %3 = vector.load %arg3[%c0_2, %c0_3] : memref<32x1xf32, #tpu.memory_space<vmem>>, vector<32x1xf32>
    %4 = vector.broadcast %3 : vector<32x1xf32> to vector<32x256xf32>
    %5 = arith.mulf %2, %4 : vector<32x256xf32>
    %c0_4 = arith.constant 0 : index
    %c0_5 = arith.constant 0 : index
    %6 = vector.load %arg4[%c0_4, %c0_5] : memref<32x1xf32, #tpu.memory_space<vmem>>, vector<32x1xf32>
    %7 = vector.broadcast %6 : vector<32x1xf32> to vector<32x256xf32>
    %8 = arith.addf %5, %7 : vector<32x256xf32>
    %cst = arith.constant 0.000000e+00 : f32
    %9 = vector.broadcast %cst : f32 to vector<32x256xf32>
    %10 = arith.maximumf %8, %9 : vector<32x256xf32>
    %c0_6 = arith.constant 0 : index
    %c0_7 = arith.constant 0 : index
    %11 = vector.load %arg5[%c0_6, %c0_7] : memref<32x32xbf16, #tpu.memory_space<vmem>>, vector<32x32xbf16>
    %12 = arith.truncf %10 : vector<32x256xf32> to vector<32x256xbf16>
    %cst_8 = arith.constant dense<0.000000e+00> : vector<32x256xf32>
    %13 = tpu.matmul %11, %12, %cst_8 {dimension_numbers = #tpu.dot_dimension_numbers<[1], [0], [0], [1], [0, 0, 1, 1], [], []>} : vector<32x32xbf16>, vector<32x256xbf16>, vector<32x256xf32> -> vector<32x256xf32>
    %c0_9 = arith.constant 0 : index
    %c0_10 = arith.constant 0 : index
    %c0_11 = arith.constant 0 : index
    %14 = vector.load %arg11[%c0_9, %c0_10, %c0_11] : memref<1x32x256xf32, #tpu.memory_space<vmem>>, vector<1x32x256xf32>
    %15 = vector.shape_cast %14 : vector<1x32x256xf32> to vector<32x256xf32>
    %16 = vector.shape_cast %13 : vector<32x256xf32> to vector<1x32x256xf32>
    tpu.vector_store %arg11[%c0_9, %c0_10, %c0_11], %16 {strides = array<i32>} : memref<1x32x256xf32, #tpu.memory_space<vmem>>, vector<1x32x256xf32>,
    %c0_12 = arith.constant 0 : index
    %c0_13 = arith.constant 0 : index
    %c0_14 = arith.constant 0 : index
    %17 = vector.load %arg6[%c0_12, %c0_13, %c0_14] : memref<1x48x49xbf16, #tpu.memory_space<vmem>>, vector<1x48x49xbf16>
    %18 = vector.shape_cast %17 : vector<1x48x49xbf16> to vector<48x49xbf16>
    %c0_15 = arith.constant 0 : index
    %c0_16 = arith.constant 0 : index
    %19 = vector.load %arg7[%c0_15, %c0_16] : memref<49x256xbf16, #tpu.memory_space<vmem>>, vector<49x256xbf16>
    %cst_17 = arith.constant dense<0.000000e+00> : vector<48x256xf32>
    %20 = tpu.matmul %18, %19, %cst_17 {dimension_numbers = #tpu.dot_dimension_numbers<[1], [0], [0], [1], [0, 0, 1, 1], [], []>} : vector<48x49xbf16>, vector<49x256xbf16>, vector<48x256xf32> -> vector<48x256xf32>
    %c0_18 = arith.constant 0 : index
    %c0_19 = arith.constant 0 : index
    %21 = vector.load %arg8[%c0_18, %c0_19] : memref<48x1xf32, #tpu.memory_space<vmem>>, vector<48x1xf32>
    %22 = vector.broadcast %21 : vector<48x1xf32> to vector<48x256xf32>
    %23 = arith.mulf %20, %22 : vector<48x256xf32>
    %c0_20 = arith.constant 0 : index
    %c0_21 = arith.constant 0 : index
    %24 = vector.load %arg9[%c0_20, %c0_21] : memref<48x1xf32, #tpu.memory_space<vmem>>, vector<48x1xf32>
    %25 = vector.broadcast %24 : vector<48x1xf32> to vector<48x256xf32>
    %26 = arith.addf %23, %25 : vector<48x256xf32>
    %cst_22 = arith.constant 0.000000e+00 : f32
    %27 = vector.broadcast %cst_22 : f32 to vector<48x256xf32>
    %28 = arith.maximumf %26, %27 : vector<48x256xf32>
    %c0_23 = arith.constant 0 : index
    %c0_24 = arith.constant 0 : index
    %c0_25 = arith.constant 0 : index
    %29 = vector.load %arg11[%c0_23, %c0_24, %c0_25] : memref<1x32x256xf32, #tpu.memory_space<vmem>>, vector<1x32x256xf32>
    %30 = vector.shape_cast %29 : vector<1x32x256xf32> to vector<32x256xf32>
    %c0_26 = arith.constant 0 : index
    %c0_27 = arith.constant 0 : index
    %31 = vector.load %arg10[%c0_26, %c0_27] : memref<32x48xbf16, #tpu.memory_space<vmem>>, vector<32x48xbf16>
    %32 = arith.truncf %28 : vector<48x256xf32> to vector<48x256xbf16>
    %cst_28 = arith.constant dense<0.000000e+00> : vector<32x256xf32>
    %33 = tpu.matmul %31, %32, %cst_28 {dimension_numbers = #tpu.dot_dimension_numbers<[1], [0], [0], [1], [0, 0, 1, 1], [], []>} : vector<32x48xbf16>, vector<48x256xbf16>, vector<32x256xf32> -> vector<32x256xf32>
    %34 = arith.addf %30, %33 : vector<32x256xf32>
    %c0_29 = arith.constant 0 : index
    %c0_30 = arith.constant 0 : index
    %c0_31 = arith.constant 0 : index
    %35 = vector.load %arg11[%c0_29, %c0_30, %c0_31] : memref<1x32x256xf32, #tpu.memory_space<vmem>>, vector<1x32x256xf32>
    %36 = vector.shape_cast %35 : vector<1x32x256xf32> to vector<32x256xf32>
    %37 = vector.shape_cast %34 : vector<32x256xf32> to vector<1x32x256xf32>
    tpu.vector_store %arg11[%c0_29, %c0_30, %c0_31], %37 {strides = array<i32>} : memref<1x32x256xf32, #tpu.memory_space<vmem>>, vector<1x32x256xf32>,
    return
  }
  func.func @transform_0(%arg0: i32, %arg1: i32) -> (i32, i32, i32) {
    %c0_i32 = arith.constant 0 : i32
    %c0_i32_0 = arith.constant 0 : i32
    return %arg1, %c0_i32, %arg0 : i32, i32, i32
  }
  func.func @transform_1(%arg0: i32, %arg1: i32) -> (i32, i32) {
    %c0_i32 = arith.constant 0 : i32
    %c0_i32_0 = arith.constant 0 : i32
    %c0_i32_1 = arith.constant 0 : i32
    return %c0_i32, %c0_i32_0 : i32, i32
  }
  func.func @transform_2(%arg0: i32, %arg1: i32) -> (i32, i32) {
    %c0_i32 = arith.constant 0 : i32
    %c0_i32_0 = arith.constant 0 : i32
    %c0_i32_1 = arith.constant 0 : i32
    return %c0_i32, %c0_i32_0 : i32, i32
  }
  func.func @transform_3(%arg0: i32, %arg1: i32) -> (i32, i32) {
    %c0_i32 = arith.constant 0 : i32
    %c0_i32_0 = arith.constant 0 : i32
    %c0_i32_1 = arith.constant 0 : i32
    return %c0_i32, %c0_i32_0 : i32, i32
  }
  func.func @transform_4(%arg0: i32, %arg1: i32) -> (i32, i32, i32) {
    %c0_i32 = arith.constant 0 : i32
    %c0_i32_0 = arith.constant 0 : i32
    %c0_i32_1 = arith.constant 0 : i32
    return %arg1, %c0_i32, %c0_i32_0 : i32, i32, i32
  }
  func.func @transform_5(%arg0: i32, %arg1: i32) -> (i32, i32) {
    %c0_i32 = arith.constant 0 : i32
    %c0_i32_0 = arith.constant 0 : i32
    return %c0_i32, %arg0 : i32, i32
  }
  func.func @transform_6(%arg0: i32, %arg1: i32) -> (i32, i32) {
    %c0_i32 = arith.constant 0 : i32
    %c0_i32_0 = arith.constant 0 : i32
    %c0_i32_1 = arith.constant 0 : i32
    return %c0_i32, %c0_i32_0 : i32, i32
  }
  func.func @transform_7(%arg0: i32, %arg1: i32) -> (i32, i32) {
    %c0_i32 = arith.constant 0 : i32
    %c0_i32_0 = arith.constant 0 : i32
    %c0_i32_1 = arith.constant 0 : i32
    return %c0_i32, %c0_i32_0 : i32, i32
  }
  func.func @transform_8(%arg0: i32, %arg1: i32) -> (i32, i32) {
    %c0_i32 = arith.constant 0 : i32
    %c0_i32_0 = arith.constant 0 : i32
    %c0_i32_1 = arith.constant 0 : i32
    return %c0_i32, %c0_i32_0 : i32, i32
  }
  func.func @transform_9(%arg0: i32, %arg1: i32) -> (i32, i32, i32) {
    %c0_i32 = arith.constant 0 : i32
    %c0_i32_0 = arith.constant 0 : i32
    return %arg1, %c0_i32, %arg0 : i32, i32, i32
  }
}

</mosaic_0001>

<bundles_post_ra>
// kernel: _lambda_.2
= control target key start
LH: loop header
LB: loop body
LE: loop exit
PB: predicated region body
PF: predicated region fallthrough
CT: control target
= control target key end

     0   :  { %s578_s15 = smov 0   ;;  %s580_s16 = smov 0   ;;  %s627_s0 = inlined_call_operand.vmem [shape: bf16[2,4,256], index: 0, kind: input, shape index: {}]   ;;  %s628_s1 = inlined_call_operand.vmem [shape: f32[4,1], index: 1, kind: input, shape index: {}]   ;;  %s629_s2 = inlined_call_operand.vmem [shape: f32[4,1], index: 2, kind: input, shape index: {}]   ;;  %s630_s3 = inlined_call_operand.vmem [shape: bf16[32,4], index: 3, kind: input, shape index: {}]   ;;  %s631_s4 = inlined_call_operand.vmem [shape: bf16[2,32,256], index: 4, kind: output, shape index: {}]  }
   0x1   :  { %s582_s17 = smov 0  }
   0x2 LB: > { %s23_s18 = sadd.s32 1, %s545_s16  ;;  %p474_p0 = scmp.ge.s32.totalorder %s549_s17, 1  ;;  %s549_s17 = sphi %s582_s17, %s14_s17   ;;  %s545_s16 = sphi %s580_s16, %s633_s16   ;;  %s541_s15 = sphi %s578_s15, %s632_s15  }
   0x3   : > { %p24_p1 = scmp.ge.s32.totalorder %s23_s18, 2  ;;  %p183_p2 = scmp.lt.s32.totalorder %s549_s17, 3 }
   0x5   : > { %s635_s18 = smov (%p24_p1, %s23_s18), 0  ;;  %p184_p3 = pnand %p474_p0, %p183_p2 }
   0x6   : > { %v240_v0 = vld [vmem:[%s628_s1] sm:$0xf] (!%p184_p3)  ;;  %v551_v1 = vmov (!%p184_p3), 0   ;;  %p218_p4 = scmp.lt.s32.totalorder (!%p184_p3), %s541_s15, 1  ;;  %v552_v3 = vmov (!%p184_p3), 839922192   ;;  %v248_v5 = vlaneseq (!%p184_p3) }
   0x7   : > { %187 = sbr.rel (%p184_p3) target bundleno = 372 (0x174), region = 36  ;;  %524 = vset.pattern.permute.xlu0 (!%p184_p3), %v551_v1  ;;  %334 = vmatprep.mubr.bf16.mxu0 (!%p184_p3), %v551_v1  ;;  %v254_v2 = vld [vmem:[%s629_s2] sm:$0xf] (!%p184_p3)  ;;  %v246_v4 = vunpack.c.l.s4 (!%p184_p3), %v552_v3  ;;  %vm295_vm0 = vcmask (!%p184_p3), 1041408   ;;  %v526_v23 = vld [vmem:[%s630_s3 + $0x8] sm:$0xff] (!%p184_p3)   ;;  %vm288_vm1 = vcmask (!%p184_p3), 31744  }
   0x8   : > { %243 = vperm.xlu0 (!%p184_p3), %524, %v240_v0   ;;  %344 = vmatprep.mubr.bf16.mxu1 (!%p184_p3), %v551_v1  ;;  %v249_v7 = vshrl.u32 (!%p184_p3), %v248_v5, 7  ;;  %v525_v22 = vld [vmem:[%s630_s3] sm:$0xff] (!%p184_p3)  }
   0x9   : > { %v247_v6 = vunpack.c.0.s8 (!%p184_p3), %v246_v4 }
   0xb   : > { %v250_v8 = vsub.s32 (!%p184_p3), %v247_v6, %v249_v7 }
   0xc   : > { %257 = vperm.xlu0 (!%p184_p3), %524, %v254_v2  }
   0xe   : > { %s637_s15 = smov (!%p218_p4, %s541_s15), 1 }
   0xf   : > { %s490_s23 = sshll.u32 %s637_s15, 2  ;;  %s491_s5 = sshll.u32 %s637_s15, 5 }
  0x10   : > { %s225_s26 = scalar_lea.vmem %s627_s0, %s490_s23  ;;  %s235_s8 = scalar_lea.vmem %s631_s4, %s491_s5 }
  0x11   : > { %v238_v9 = vld [vmem:[%s225_s26] sm:$0xf] }
  0x12   : > { %v239_v11 = vunpack.c.l.bf16 %v238_v9 }
  0x87   : > { %v244_v10 = vpop.permute.xlu0 %243 }
  0x88   : > { %v251_v12 = vrot.slane %v244_v10, %v250_v8 }
  0x8a   : > { %v253_v14 = vmul.f32 %v251_v12, %v239_v11 }
  0x8b   : > { %v258_v13 = vpop.permute.xlu0 %257 }
  0x8c   : > { %v265_v15 = vrot.slane %v258_v13, %v250_v8 }
  0x8e   : > { %v267_v16 = vadd.f32 %v265_v15, %v253_v14 }
  0x90   : > { %v268_v17 = vmax.f32 %v267_v16, 0.0 }
  0x92   : > { %v274_v18 = vcombine.high %v268_v17, %v268_v17  ;;  %v276_v19 = vpack.c.bf16 %v268_v17, %v268_v17 }
  0x94   : > { %v277_v20 = vpack.c.bf16 %v274_v18, %v274_v18  ;;  %v297_v21 = vsel %vm295_vm0, %v276_v19, 0 }
  0x96   : > { %481 = vmatprep.subr.msk.bf16.mxu0 %vm295_vm0, %v277_v20  ;;  %496 = vmatprep.subr.msk.bf16.mxu1 %vm295_vm0, %v277_v20 }
  0x97   : > { %303 = vmatpush1.bf16.msra.mxu0 %v297_v21  ;;  %497 = vmatpush1.bf16.msra.mxu1 %v297_v21 }
  0x9a   : > { %482 = vmatmul.mubr.msk.bf16.vlgmr.msra.gmra.mrb[0].mxu0 %vm288_vm1, %v525_v22  ;;  %483 = vmatmul.mubr.msk.bf16.vlgmr.msra.gmra.mrb[0].mxu1 %vm288_vm1, %v526_v23 }
 0x16d   : > { %v336_v24 = vpop.f32.mrb[0].mxu0  ;;  %v346_v25 = vpop.f32.mrb[0].mxu1 }
 0x16e   : > { %v338_v26 = vpop.f32.mrb[1].mxu0  ;;  %v348_v27 = vpop.f32.mrb[1].mxu1 }
 0x16f   : > { %v492_v28 = vpack.c.bf16 %v338_v26, %v336_v24  ;;  %v494_v29 = vpack.c.bf16 %v348_v27, %v346_v25  ;;  %v340_v30 = vpop.f32.mrb[2].mxu0  ;;  %v350_v31 = vpop.f32.mrb[2].mxu1 }
 0x170   : > { %v342_v32 = vpop.f32.mrb[3].mxu0  ;;  %v352_v33 = vpop.f32.mrb[3].mxu1 }
 0x171   : > { %379 = vst [vmem:[%s235_s8] sm:$0xff] %v492_v28  ;;  %381 = vst [vmem:[%s235_s8 + $0x10] sm:$0xff] %v494_v29  ;;  %v493_v34 = vpack.c.bf16 %v342_v32, %v340_v30  ;;  %v495_v35 = vpack.c.bf16 %v352_v33, %v350_v31 }
 0x173   : > { %380 = vst [vmem:[%s235_s8 + $0x8] sm:$0xff] %v493_v34  ;;  %382 = vst [vmem:[%s235_s8 + $0x18] sm:$0xff] %v495_v35 }
 0x174 PF: > { %s14_s17 = sadd.s32 1, %s549_s17   ;;  %s632_s15 = smov %s545_s16 }
 0x175   : > { %p11_p5 = scmp.ge.s32.totalorder %s14_s17, 4   ;;  %s633_s16 = smov %s635_s18 }
 0x177   :  { %13 = sbr.rel (!%p11_p5) target bundleno = 2 (0x2), region = 66 }

// kernel: _lambda_.3
= control target key start
LH: loop header
LB: loop body
LE: loop exit
PB: predicated region body
PF: predicated region fallthrough
CT: control target
= control target key end

     0   :  { %s1222_s30 = smov 0   ;;  %s1224_s10 = smov 0   ;;  %s1374_s0 = inlined_call_operand.vmem [shape: bf16[2,32,256], index: 0, kind: input, shape index: {}]   ;;  %s1375_s1 = inlined_call_operand.vmem [shape: f32[32,1], index: 1, kind: input, shape index: {}]   ;;  %s1376_s2 = inlined_call_operand.vmem [shape: f32[32,1], index: 2, kind: input, shape index: {}]   ;;  %s1377_s3 = inlined_call_operand.vmem [shape: bf16[32,32], index: 3, kind: input, shape index: {}]   ;;  %s1378_s4 = inlined_call_operand.vmem [shape: bf16[2,48,49], index: 4, kind: input, shape index: {}]   ;;  %s1379_s5 = inlined_call_operand.vmem [shape: bf16[49,256], index: 5, kind: input, shape index: {}]   ;;  %s1380_s6 = inlined_call_operand.vmem [shape: f32[48,1], index: 6, kind: input, shape index: {}]   ;;  %s1381_s7 = inlined_call_operand.vmem [shape: f32[48,1], index: 7, kind: input, shape index: {}]   ;;  %s1382_s8 = inlined_call_operand.vmem [shape: bf16[32,48], index: 8, kind: input, shape index: {}]   ;;  %s1383_s9 = inlined_call_operand.vmem [shape: f32[2,32,256], index: 9, kind: output, shape index: {}]  }
   0x1   :  { %s1226_s11 = smov 0  }
   0x2 LB: > { %s28_s12 = sadd.s32 1, %s1165_s10  ;;  %p1061_p0 = scmp.ge.s32.totalorder %s1169_s11, 1  ;;  %s1169_s11 = sphi %s1226_s11, %s19_s11   ;;  %s1165_s10 = sphi %s1224_s10, %s1385_s10   ;;  %s1161_s30 = sphi %s1222_s30, %s1384_s30  }
   0x3   : > { %p29_p1 = scmp.ge.s32.totalorder %s28_s12, 2  ;;  %p329_p2 = scmp.lt.s32.totalorder %s1169_s11, 3 }
   0x5   : > { %s1387_s12 = smov (%p29_p1, %s28_s12), 0  ;;  %p330_p3 = pnand %p1061_p0, %p329_p2 }
   0x6   : > { %v1129_v0 = vld [vmem:[%s1379_s5 + $0x4] ss:$8 sps:$4 sm:$0xff] (!%p330_p3)   ;;  %v1131_v1 = vld [vmem:[%s1379_s5] ss:$8 sps:$4 sm:$0xff] (!%p330_p3)   ;;  %v1171_v2 = vmov (!%p330_p3), 0   ;;  %p384_p4 = scmp.lt.s32.totalorder (!%p330_p3), %s1161_s30, 1 }
   0x7   : > { %333 = sbr.rel (%p330_p3) target bundleno = 491 (0x1eb), region = 56  ;;  %699 = vmatprep.mubr.bf16.mxu1 (!%p330_p3), %v1171_v2  ;;  %1128 = vset.pattern.permute.xlu1 (!%p330_p3), %v1171_v2  ;;  %v1132_v3 = vld [vmem:[%s1379_s5 + $0x14] ss:$8 sps:$4 sm:$0xff] (!%p330_p3)   ;;  %vm658_vm0 = vcmask (!%p330_p3), 1040384   ;;  %v1134_v4 = vld [vmem:[%s1379_s5 + $0x10] ss:$8 sps:$4 sm:$0xff] (!%p330_p3)  }
   0x8   : > { %667 = vmatprep.subr.bf16.mxu1 (!%p330_p3), %v1129_v0  ;;  %1127 = vset.pattern.permute.xlu0 (!%p330_p3), %v1171_v2  ;;  %v1135_v5 = vld [vmem:[%s1379_s5 + $0x24] ss:$8 sps:$4 sm:$0xff] (!%p330_p3)   ;;  %v597_v6 = vld [vmem:[%s1379_s5 + $0x30] sm:$0x11] (!%p330_p3)  ;;  %v660_v10 = vsel (!%p330_p3), %vm658_vm0, 65535, %v1171_v2  ;;  %v430_v16 = vld [vmem:[%s1375_s1 + $0x18] sm:$0xff] (!%p330_p3) }
   0x9   : > { %668 = vmatpush1.bf16.msra.mxu1 (!%p330_p3), %v1131_v1  ;;  %556 = vmatprep.mubr.bf16.mxu0 (!%p330_p3), %v1171_v2  ;;  %v459_v7 = vld [vmem:[%s1376_s2] sm:$0xff] (!%p330_p3)  ;;  %v1081_v9 = vcombine.high (!%p330_p3), %v597_v6, %v597_v6  ;;  %v460_v11 = vld [vmem:[%s1376_s2 + $0x8] sm:$0xff] (!%p330_p3)  ;;  %v1080_v14 = vcombine.low (!%p330_p3), %v597_v6, %v597_v6  ;;  %v429_v17 = vld [vmem:[%s1375_s1 + $0x10] sm:$0xff] (!%p330_p3)  ;;  %vm648_vm1 = vcmask (!%p330_p3), 400384   ;;  %vm517_vm2 = vcmask (!%p330_p3), 261120  }
   0xa   : > { %669 = vmatprep.subr.bf16.mxu1 (!%p330_p3), %v1132_v3  ;;  %v427_v8 = vld [vmem:[%s1375_s1] sm:$0xff] (!%p330_p3)  ;;  %465 = vperm.xlu1 (!%p330_p3), %1128, %v459_v7   ;;  %v428_v12 = vld [vmem:[%s1375_s1 + $0x8] sm:$0xff] (!%p330_p3)  ;;  %v462_v20 = vld [vmem:[%s1376_s2 + $0x18] sm:$0xff] (!%p330_p3)  ;;  %vm866_vm3 = vcmask (!%p330_p3), 392192  }
   0xb   : > { %433 = vperm.xlu0 (!%p330_p3), %1127, %v427_v8   ;;  %v1137_v13 = vld [vmem:[%s1379_s5 + $0x20] ss:$8 sps:$4 sm:$0xff] (!%p330_p3)   ;;  %v665_v15 = vand.u32 (!%p330_p3), %v1081_v9, %v660_v10  ;;  %v662_v18 = vand.u32 (!%p330_p3), %v1080_v14, %v660_v10  ;;  %v461_v21 = vld [vmem:[%s1376_s2 + $0x10] sm:$0xff] (!%p330_p3)  ;;  %v733_v27 = vld [vmem:[%s1380_s6 + $0x18] sm:$0xff] (!%p330_p3) }
   0xc   : > { %v731_v22 = vld [vmem:[%s1380_s6 + $0x8] sm:$0xff] (!%p330_p3)  ;;  %v730_v23 = vld [vmem:[%s1380_s6] sm:$0xff] (!%p330_p3)  ;;  %v732_v28 = vld [vmem:[%s1380_s6 + $0x10] sm:$0xff] (!%p330_p3) }
   0xd   : > { %670 = vmatpush1.bf16.msra.mxu1 (!%p330_p3), %v1134_v4  ;;  %v779_v25 = vld [vmem:[%s1381_s7 + $0x8] sm:$0xff] (!%p330_p3)  ;;  %v778_v26 = vld [vmem:[%s1381_s7] sm:$0xff] (!%p330_p3)  ;;  %v781_v30 = vld [vmem:[%s1381_s7 + $0x18] sm:$0xff] (!%p330_p3) }
   0xe   : > { %s1389_s30 = smov (!%p384_p4, %s1161_s30), 1  ;;  %671 = vmatprep.subr.bf16.mxu1 %v1135_v5  ;;  %470 = vperm.xlu1 %1128, %v460_v11   ;;  %v780_v31 = vld [vmem:[%s1381_s7 + $0x10] sm:$0xff]  ;;  %v735_v32 = vld [vmem:[%s1380_s6 + $0x28] sm:$0xff]  ;;  %v734_v33 = vld [vmem:[%s1380_s6 + $0x20] sm:$0xff] }
   0xf   : > { %s1101_s29 = smul.u32 24, %s1389_s30  ;;  %438 = vperm.xlu0 %1127, %v428_v12   ;;  %v783_v34 = vld [vmem:[%s1381_s7 + $0x28] sm:$0xff]  ;;  %v782_v35 = vld [vmem:[%s1381_s7 + $0x20] sm:$0xff]  ;;  %s1091_s20 = sshll.u32 %s1389_s30, 5 }
  0x10   : > { %s391_s24 = scalar_lea.vmem %s1374_s0, %s1091_s20  ;;  %s1092_s16 = sshll.u32 %s1389_s30, 6 }
  0x11   : > { %s1284_s21 = scalar_lea.vmem %s1378_s4, %s1101_s29  ;;  %672 = vmatpush1.bf16.msra.mxu1 %v1137_v13  ;;  %v415_v36 = vld [vmem:[%s391_s24] sm:$0xff]  ;;  %v416_v39 = vld [vmem:[%s391_s24 + $0x8] sm:$0xff]  ;;  %v418_v46 = vld [vmem:[%s391_s24 + $0x18] sm:$0xff]  ;;  %s412_s18 = scalar_lea.vmem %s1383_s9, %s1092_s16 }
  0x12   : > { %673 = vmatprep.subr.bf16.mxu1 %v665_v15  ;;  %448 = vperm.xlu1 %1128, %v430_v16   ;;  %v1140_v19 = vld [vmem:[%s1284_s21] sm:$0xff]   ;;  %v1141_v24 = vld [vmem:[%s1284_s21 + $0x8] sm:$0xff]   ;;  %v1142_v29 = vld [vmem:[%s1284_s21 + $0x10] sm:$0xff]   ;;  %v419_v37 = vunpack.c.l.bf16 %v415_v36  ;;  %v420_v38 = vunpack.c.h.bf16 %v415_v36  ;;  %v421_v44 = vunpack.c.l.bf16 %v416_v39  ;;  %v422_v45 = vunpack.c.h.bf16 %v416_v39 }
  0x13   : > { %443 = vperm.xlu0 %1127, %v429_v17   ;;  %v417_v47 = vld [vmem:[%s391_s24 + $0x10] sm:$0xff]  ;;  %v425_v51 = vunpack.c.l.bf16 %v418_v46  ;;  %v426_v52 = vunpack.c.h.bf16 %v418_v46 }
  0x14   : > { %v423_v56 = vunpack.c.l.bf16 %v417_v47  ;;  %v424_v57 = vunpack.c.h.bf16 %v417_v47 }
  0x15   : > { %674 = vmatpush1.bf16.msra.mxu1 %v662_v18 }
  0x16   : > { %480 = vperm.xlu1 %1128, %v462_v20  }
  0x17   : > { %475 = vperm.xlu0 %1127, %v461_v21   ;;  %v1143_v21 = vld [vmem:[%s1377_s3] sm:$0xff]  }
  0x18   : > { %1082 = vmatmul.mubr.msk.bf16.vlgmr.msra.gmra.mrb[0].mxu1 %vm648_vm1, %v1140_v19 }
  0x19   : > { %709 = vmatprep.mubr.bf16.mxu1 %v1171_v2 }
  0x1a   : > { %743 = vperm.xlu1 %1128, %v731_v22   ;;  %v1144_v22 = vld [vmem:[%s1377_s3 + $0x8] sm:$0xff]  }
  0x1b   : > { %738 = vperm.xlu0 %1127, %v730_v23  }
  0x1e   : > { %791 = vperm.xlu1 %1128, %v779_v25  }
  0x1f   : > { %786 = vperm.xlu0 %1127, %v778_v26  }
  0x20   : > { %1083 = vmatmul.mubr.msk.bf16.gmra.mrb[4].mxu1 %vm648_vm1, %v1141_v24 }
  0x21   : > { %719 = vmatprep.mubr.bf16.mxu1 %v1171_v2 }
  0x22   : > { %753 = vperm.xlu1 %1128, %v733_v27  }
  0x23   : > { %748 = vperm.xlu0 %1127, %v732_v28  }
  0x26   : > { %801 = vperm.xlu1 %1128, %v781_v30  }
  0x27   : > { %796 = vperm.xlu0 %1127, %v780_v31  }
  0x28   : > { %1084 = vmatmul.mubr.msk.bf16.gmra.mrb[8].mxu1 %vm648_vm1, %v1142_v29 }
  0x2a   : > { %763 = vperm.xlu1 %1128, %v735_v32  }
  0x2b   : > { %758 = vperm.xlu0 %1127, %v734_v33  }
  0x2e   : > { %811 = vperm.xlu1 %1128, %v783_v34  }
  0x2f   : > { %806 = vperm.xlu0 %1127, %v782_v35  }
  0x89   : > { %v466_v40 = vpop.permute.xlu1 %465 }
  0x8a   : > { %v434_v41 = vpop.permute.xlu0 %433 }
  0x8b   : > { %v451_v42 = vmul.f32 %v434_v41, %v419_v37  ;;  %v452_v43 = vmul.f32 %v434_v41, %v420_v38 }
  0x8d   : > { %v483_v48 = vadd.f32 %v466_v40, %v451_v42  ;;  %v471_v49 = vpop.permute.xlu1 %470  ;;  %v484_v53 = vadd.f32 %v466_v40, %v452_v43 }
  0x8e   : > { %v439_v50 = vpop.permute.xlu0 %438 }
  0x8f   : > { %v453_v54 = vmul.f32 %v439_v50, %v421_v44  ;;  %v454_v55 = vmul.f32 %v439_v50, %v422_v45  ;;  %v492_v62 = vmax.f32 %v484_v53, 0.0  ;;  %v491_v63 = vmax.f32 %v483_v48, 0.0 }
  0x91   : > { %v485_v58 = vadd.f32 %v471_v49, %v453_v54  ;;  %v486_v59 = vadd.f32 %v471_v49, %v454_v55  ;;  %v449_v60 = vpop.permute.xlu1 %448 }
  0x92   : > { %v444_v61 = vpop.permute.xlu0 %443  ;;  %v457_v0 = vmul.f32 %v449_v60, %v425_v51  ;;  %v458_v1 = vmul.f32 %v449_v60, %v426_v52 }
  0x93   : > { %v455_v3 = vmul.f32 %v444_v61, %v423_v56  ;;  %v456_v4 = vmul.f32 %v444_v61, %v424_v57  ;;  %v494_v5 = vmax.f32 %v486_v59, 0.0  ;;  %v493_v6 = vmax.f32 %v485_v58, 0.0 }
  0x95   : > { %v481_v7 = vpop.permute.xlu1 %480  ;;  %v504_v9 = vpack.c.bf16 %v494_v5, %v492_v62  ;;  %v503_v10 = vpack.c.bf16 %v493_v6, %v491_v63 }
  0x96   : > { %v476_v8 = vpop.permute.xlu0 %475  ;;  %v489_v11 = vadd.f32 %v481_v7, %v457_v0  ;;  %v490_v12 = vadd.f32 %v481_v7, %v458_v1 }
  0x97   : > { %v487_v13 = vadd.f32 %v476_v8, %v455_v3  ;;  %v488_v14 = vadd.f32 %v476_v8, %v456_v4  ;;  %524 = vmatprep.subr.bf16.mxu0 %v504_v9 }
  0x98   : > { %v497_v15 = vmax.f32 %v489_v11, 0.0  ;;  %v498_v16 = vmax.f32 %v490_v12, 0.0  ;;  %525 = vmatpush1.bf16.msra.mxu0 %v503_v10 }
  0x99   : > { %v495_v17 = vmax.f32 %v487_v13, 0.0  ;;  %v496_v18 = vmax.f32 %v488_v14, 0.0  ;;  %v744_v24 = vpop.permute.xlu1 %743 }
  0x9a   : > { %v739_v23 = vpop.permute.xlu0 %738 }
  0x9b   : > { %v506_v19 = vpack.c.bf16 %v498_v16, %v496_v18  ;;  %v505_v20 = vpack.c.bf16 %v497_v15, %v495_v17 }
  0x9d   : > { %526 = vmatprep.subr.bf16.mxu0 %v506_v19  ;;  %v792_v26 = vpop.permute.xlu1 %791 }
  0x9e   : > { %527 = vmatpush1.bf16.msra.mxu0 %v505_v20  ;;  %v787_v25 = vpop.permute.xlu0 %786 }
  0xa1   : > { %1069 = vmatmul.mubr.msk.bf16.vlgmr.msra.gmra.mrb[0].mxu0 %vm517_vm2, %v1143_v21  ;;  %v754_v31 = vpop.permute.xlu1 %753 }
  0xa2   : > { %566 = vmatprep.mubr.bf16.mxu0 %v1171_v2  ;;  %v749_v27 = vpop.permute.xlu0 %748 }
  0xa5   : > { %v802_v44 = vpop.permute.xlu1 %801 }
  0xa6   : > { %v797_v40 = vpop.permute.xlu0 %796 }
  0xa9   : > { %1070 = vmatmul.mubr.msk.bf16.gmra.mrb[4].mxu0 %vm517_vm2, %v1144_v22  ;;  %v764_v61 = vpop.permute.xlu1 %763 }
  0xaa   : > { %905 = vmatprep.mubr.bf16.mxu0 %v1171_v2  ;;  %v759_v57 = vpop.permute.xlu0 %758 }
  0xad   : > { %v812_v15 = vpop.permute.xlu1 %811 }
  0xae   : > { %v807_v8 = vpop.permute.xlu0 %806 }
  0xeb   : > { %v701_v28 = vpop.f32.mrb[0].mxu1 }
  0xec   : > { %v766_v29 = vmul.f32 %v739_v23, %v701_v28  ;;  %v703_v30 = vpop.f32.mrb[1].mxu1 }
  0xed   : > { %v767_v32 = vmul.f32 %v739_v23, %v703_v30  ;;  %v705_v33 = vpop.f32.mrb[2].mxu1 }
  0xee   : > { %v814_v34 = vadd.f32 %v787_v25, %v766_v29  ;;  %v768_v35 = vmul.f32 %v744_v24, %v705_v33  ;;  %v707_v36 = vpop.f32.mrb[3].mxu1 }
  0xef   : > { %v815_v37 = vadd.f32 %v787_v25, %v767_v32  ;;  %v769_v38 = vmul.f32 %v744_v24, %v707_v36 }
  0xf0   : > { %v816_v39 = vadd.f32 %v792_v26, %v768_v35  ;;  %v826_v42 = vmax.f32 %v814_v34, 0.0 }
  0xf1   : > { %v817_v41 = vadd.f32 %v792_v26, %v769_v38  ;;  %v827_v45 = vmax.f32 %v815_v37, 0.0  ;;  %v1145_v26 = vld [vmem:[%s1382_s8] sm:$0xff]  }
  0xf2   : > { %v828_v43 = vmax.f32 %v816_v39, 0.0 }
  0xf3   : > { %v829_v46 = vmax.f32 %v817_v41, 0.0  ;;  %v711_v47 = vpop.f32.mrb[4].mxu1 }
  0xf4   : > { %v850_v48 = vpack.c.bf16 %v828_v43, %v826_v42  ;;  %v770_v49 = vmul.f32 %v749_v27, %v711_v47  ;;  %v713_v50 = vpop.f32.mrb[5].mxu1 }
  0xf5   : > { %v771_v51 = vmul.f32 %v749_v27, %v713_v50  ;;  %v715_v52 = vpop.f32.mrb[6].mxu1  ;;  %v851_v53 = vpack.c.bf16 %v829_v46, %v827_v45  ;;  %v1146_v27 = vld [vmem:[%s1382_s8 + $0x8] sm:$0xff]  }
  0xf6   : > { %v818_v54 = vadd.f32 %v797_v40, %v770_v49  ;;  %v772_v55 = vmul.f32 %v754_v31, %v715_v52  ;;  %v717_v56 = vpop.f32.mrb[7].mxu1 }
  0xf7   : > { %v819_v58 = vadd.f32 %v797_v40, %v771_v51  ;;  %v773_v59 = vmul.f32 %v754_v31, %v717_v56  ;;  %873 = vmatprep.subr.bf16.mxu0 %v851_v53 }
  0xf8   : > { %v820_v60 = vadd.f32 %v802_v44, %v772_v55  ;;  %874 = vmatpush1.bf16.msra.mxu0 %v850_v48  ;;  %v830_v63 = vmax.f32 %v818_v54, 0.0 }
  0xf9   : > { %v821_v62 = vadd.f32 %v802_v44, %v773_v59  ;;  %v831_v1 = vmax.f32 %v819_v58, 0.0 }
  0xfa   : > { %v832_v0 = vmax.f32 %v820_v60, 0.0 }
  0xfb   : > { %v833_v3 = vmax.f32 %v821_v62, 0.0  ;;  %v721_v4 = vpop.f32.mrb[8].mxu1 }
  0xfc   : > { %v852_v5 = vpack.c.bf16 %v832_v0, %v830_v63  ;;  %v774_v6 = vmul.f32 %v759_v57, %v721_v4  ;;  %v723_v7 = vpop.f32.mrb[9].mxu1 }
  0xfd   : > { %v775_v9 = vmul.f32 %v759_v57, %v723_v7  ;;  %v725_v10 = vpop.f32.mrb[10].mxu1  ;;  %v853_v11 = vpack.c.bf16 %v833_v3, %v831_v1 }
  0xfe   : > { %v822_v12 = vadd.f32 %v807_v8, %v774_v6  ;;  %v776_v13 = vmul.f32 %v764_v61, %v725_v10  ;;  %v727_v14 = vpop.f32.mrb[11].mxu1 }
  0xff   : > { %v823_v16 = vadd.f32 %v807_v8, %v775_v9  ;;  %v777_v17 = vmul.f32 %v764_v61, %v727_v14  ;;  %875 = vmatprep.subr.bf16.mxu0 %v853_v11 }
 0x100   : > { %v824_v18 = vadd.f32 %v812_v15, %v776_v13  ;;  %876 = vmatpush1.bf16.msra.mxu0 %v852_v5  ;;  %v834_v20 = vmax.f32 %v822_v12, 0.0 }
 0x101   : > { %v825_v19 = vadd.f32 %v812_v15, %v777_v17  ;;  %v835_v22 = vmax.f32 %v823_v16, 0.0 }
 0x102   : > { %v836_v21 = vmax.f32 %v824_v18, 0.0 }
 0x103   : > { %v837_v23 = vmax.f32 %v825_v19, 0.0 }
 0x104   : > { %v854_v24 = vpack.c.bf16 %v836_v21, %v834_v20 }
 0x105   : > { %v855_v25 = vpack.c.bf16 %v837_v23, %v835_v22 }
 0x107   : > { %877 = vmatprep.subr.bf16.mxu0 %v855_v25 }
 0x108   : > { %878 = vmatpush1.bf16.msra.mxu0 %v854_v24 }
 0x10b   : > { %1087 = vmatmul.mubr.msk.bf16.vlgmr.msra.gmra.mrb[0].mxu0 %vm866_vm3, %v1145_v26 }
 0x10c   : > { %915 = vmatprep.mubr.bf16.mxu0 %v1171_v2 }
 0x113   : > { %1088 = vmatmul.mubr.msk.bf16.gmra.mrb[4].mxu0 %vm866_vm3, %v1146_v27 }
 0x1de   : > { %v907_v28 = vpop.f32.mrb[0].mxu0 }
 0x1df   : > { %934 = vst [vmem:[%s412_s18] sm:$0xff] %v907_v28  ;;  %v909_v29 = vpop.f32.mrb[1].mxu0 }
 0x1e0   : > { %935 = vst [vmem:[%s412_s18 + $0x8] sm:$0xff] %v909_v29  ;;  %v911_v30 = vpop.f32.mrb[2].mxu0 }
 0x1e1   : > { %936 = vst [vmem:[%s412_s18 + $0x10] sm:$0xff] %v911_v30  ;;  %v913_v31 = vpop.f32.mrb[3].mxu0 }
 0x1e2   : > { %937 = vst [vmem:[%s412_s18 + $0x18] sm:$0xff] %v913_v31 }
 0x1e6   : > { %v917_v32 = vpop.f32.mrb[4].mxu0 }
 0x1e7   : > { %938 = vst [vmem:[%s412_s18 + $0x20] sm:$0xff] %v917_v32  ;;  %v919_v2 = vpop.f32.mrb[5].mxu0 }
 0x1e8   : > { %939 = vst [vmem:[%s412_s18 + $0x28] sm:$0xff] %v919_v2  ;;  %v921_v33 = vpop.f32.mrb[6].mxu0 }
 0x1e9   : > { %940 = vst [vmem:[%s412_s18 + $0x30] sm:$0xff] %v921_v33  ;;  %v923_v34 = vpop.f32.mrb[7].mxu0 }
 0x1ea   : > { %941 = vst [vmem:[%s412_s18 + $0x38] sm:$0xff] %v923_v34 }
 0x1eb PF: > { %s19_s11 = sadd.s32 1, %s1169_s11   ;;  %s1384_s30 = smov %s1165_s10 }
 0x1ec   : > { %p16_p5 = scmp.ge.s32.totalorder %s19_s11, 4   ;;  %s1385_s10 = smov %s1387_s12 }
 0x1ee   :  { %18 = sbr.rel (!%p16_p5) target bundleno = 2 (0x2), region = 92 }

</bundles_post_ra>
